<compile_context>
chip_gen: v7x
topology: tpu7x:2x2x1
jax: 0.10.0
libtpu: 0.0.40
codegen_flags: <defaults>
</compile_context>

<pallas_src>
import functools

import jax
import jax.numpy as jnp
from jax.experimental import pallas as pl
from jax.experimental.pallas import tpu as pltpu


# ---------------------------------------------------------------------------
# Kernel
# ---------------------------------------------------------------------------
def _ae_kernel(dims, x_ref, w1, w2, w3, w4, w5, w6, b_ref,
               latent_ref, recon_ref):
    # dims: static tuple with the *packed* output width of each folded Linear.
    x = x_ref[...].astype(jnp.bfloat16)          # (TBp, pack*input_dim)
    b_f32 = b_ref[...]                           # (8, max_w) f32 bias slab
    b_bf16 = b_f32.astype(jnp.bfloat16)          # one tiny cast, reused 4x

    def hidden(h_bf16, w_r, layer):
        # bf16 x bf16 on the MXU, f32 accumulate, bf16 bias + ReLU (VPU).
        y = jnp.dot(h_bf16, w_r[...], preferred_element_type=jnp.float32)
        y = y.astype(jnp.bfloat16) + b_bf16[layer, :dims[layer]]
        return jnp.maximum(y, 0.0)

    def out_lin(h_bf16, w_r, layer):
        # Output layers (latent / recon): f32 bias add, f32 result.
        y = jnp.dot(h_bf16, w_r[...], preferred_element_type=jnp.float32)
        return y + b_f32[layer, :dims[layer]]

    # ---- encoder ----  (BN folded into weights; Dropout = identity in eval)
    h = hidden(x, w1, 0)
    h = hidden(h, w2, 1)
    latent = out_lin(h, w3, 2)                   # (TBp, pack*latent_dim) f32
    latent_ref[...] = latent.astype(latent_ref.dtype)

    # ---- decoder ----
    h = hidden(latent.astype(jnp.bfloat16), w4, 3)
    h = hidden(h, w5, 4)
    recon_ref[...] = out_lin(h, w6, 5).astype(recon_ref.dtype)


# ---------------------------------------------------------------------------
# Wrapper
# ---------------------------------------------------------------------------
def autoencoder_forward(x, params, *, block_rows=4096, out_dtype=jnp.float32):
    """x: [B, input_dim] f32. params: dict from make_params().

    block_rows is the batch-tile size in *original* rows (sublane-aligned after
    packing).  Set out_dtype=jnp.bfloat16 to halve HBM write traffic if the
    consumer tolerates bf16 outputs (do NOT cast afterwards in the wrapper).
    """
    B, input_dim = x.shape
    pack = params["pack"]
    if B % pack != 0:
        raise ValueError(f"batch ({B}) must be a multiple of pack ({pack})")
    Bp = B // pack

    dims = tuple(params[f"w{i}"].shape[1] for i in range(1, 7))  # packed widths
    latent_dim = dims[2] // pack
    assert dims[5] == pack * input_dim

    # Lane-dense packing: `pack` consecutive batch rows per 128-lane row.
    # Row-major reshape -> free view (same memory), as are the un-packs below.
    x_p = x.reshape(Bp, pack * input_dim)

    # --- batch tile (in packed rows) ---
    # Big tiles amortise the ~0.35 us per-grid-step overhead.  At tbp=1024 the
    # double-buffered x/latent/recon tiles total ~3 MB (latent pads 32->128
    # lanes; x/recon are already 128-lane dense), well under even v5e's 16 MiB
    # scoped-VMEM default, so no explicit vmem_limit_bytes is needed.
    tbp_cap = max(8, block_rows // pack)
    if Bp > tbp_cap:
        tbp = tbp_cap
    elif Bp >= 16 and Bp % 16 == 0:
        tbp = Bp // 2   # >=2 grid steps so v7x can shard batch across its 2 TCs
    else:
        tbp = Bp
    grid = (pl.cdiv(Bp, tbp),)

    # Activations march down the batch axis; weights / bias slab use constant
    # index_maps so they stay VMEM-resident across all batch tiles.
    x_spec = pl.BlockSpec((tbp, pack * input_dim), lambda i: (i, 0))
    out_specs = (
        pl.BlockSpec((tbp, pack * latent_dim), lambda i: (i, 0)),
        pl.BlockSpec((tbp, pack * input_dim), lambda i: (i, 0)),
    )
    weight_specs = [pl.BlockSpec(params[f"w{k}"].shape, lambda i: (0, 0))
                    for k in range(1, 7)]
    bias_spec = pl.BlockSpec(params["bias"].shape, lambda i: (0, 0))

    out_shape = (
        jax.ShapeDtypeStruct((Bp, pack * latent_dim), out_dtype),
        jax.ShapeDtypeStruct((Bp, pack * input_dim), out_dtype),
    )

    latent_p, recon_p = pl.pallas_call(
        functools.partial(_ae_kernel, dims),
        grid=grid,
        in_specs=[x_spec] + weight_specs + [bias_spec],
        out_specs=out_specs,
        out_shape=out_shape,
        compiler_params=pltpu.CompilerParams(
            dimension_semantics=("parallel",),   # megacore sharding on v7x
        ),
    )(x_p, params["w1"], params["w2"], params["w3"],
      params["w4"], params["w5"], params["w6"], params["bias"])

    # Free row-major un-packing views back to (B, dim).
    return latent_p.reshape(B, latent_dim), recon_p.reshape(B, input_dim)


# ---------------------------------------------------------------------------
# Parameters (deterministic, PyTorch-default init; BN folded; rows packed)
# ---------------------------------------------------------------------------
def make_params(key, input_dim, latent_dim, pack=4):
    dims_io = [
        (input_dim, latent_dim * 4),       # enc lin1 (+ BN)
        (latent_dim * 4, latent_dim * 2),  # enc lin2 (+ BN)
        (latent_dim * 2, latent_dim),      # enc lin3
        (latent_dim, latent_dim * 2),      # dec lin1 (+ BN)
        (latent_dim * 2, latent_dim * 4),  # dec lin2 (+ BN)
        (latent_dim * 4, input_dim),       # dec lin3
    ]
    has_bn = (0, 1, 3, 4)
    eps = 1e-5

    max_out_p = pack * max(fo for _, fo in dims_io)
    bias_slab = jnp.zeros((8, max_out_p), jnp.float32)   # padded to 8 sublanes

    params = {"ref": {}, "pack": pack}
    keys = jax.random.split(key, 2 * len(dims_io))
    eye = jnp.eye(pack, dtype=jnp.float32)
    for i, (fan_in, fan_out) in enumerate(dims_io):
        bound = 1.0 / jnp.sqrt(jnp.float32(fan_in))
        w = jax.random.uniform(keys[2 * i], (fan_in, fan_out),
                               minval=-bound, maxval=bound, dtype=jnp.float32)
        b = jax.random.uniform(keys[2 * i + 1], (fan_out,),
                               minval=-bound, maxval=bound, dtype=jnp.float32)
        params["ref"][f"w{i + 1}"] = w
        params["ref"][f"b{i + 1}"] = b

        if i in has_bn:  # fold eval-mode BatchNorm1d into the Linear
            gamma = jnp.ones((fan_out,), jnp.float32)
            beta = jnp.zeros((fan_out,), jnp.float32)
            running_mean = jnp.zeros((fan_out,), jnp.float32)
            running_var = jnp.ones((fan_out,), jnp.float32)
            scale = gamma / jnp.sqrt(running_var + eps)
            shift = beta - running_mean * scale
            params["ref"][f"s{i + 1}"] = scale
            params["ref"][f"t{i + 1}"] = shift
        else:
            scale = jnp.ones((fan_out,), jnp.float32)
            shift = jnp.zeros((fan_out,), jnp.float32)

        w_folded = w * scale[None, :]
        b_folded = b * scale + shift
        # Block-diagonal packing: blockdiag(W',...,W') -> bf16 MXU operand.
        params[f"w{i + 1}"] = jnp.kron(eye, w_folded).astype(jnp.bfloat16)
        bias_slab = bias_slab.at[i, :pack * fan_out].set(jnp.tile(b_folded, pack))

    params["bias"] = bias_slab
    return params


# ---------------------------------------------------------------------------
# References for the self-test
# ---------------------------------------------------------------------------
def _reference_kernel_math(x_p, params, dims):
    """Plain-JAX mirror of the exact packed kernel math (bf16 weights/acts)."""
    b_f32 = params["bias"]
    b_bf16 = b_f32.astype(jnp.bfloat16)

    def hidden(h, layer):
        y = jnp.dot(h, params[f"w{layer + 1}"], preferred_element_type=jnp.float32)
        y = y.astype(jnp.bfloat16) + b_bf16[layer, :dims[layer]]
        return jnp.maximum(y, 0.0)

    def out_lin(h, layer):
        y = jnp.dot(h, params[f"w{layer + 1}"], preferred_element_type=jnp.float32)
        return y + b_f32[layer, :dims[layer]]

    h = hidden(x_p.astype(jnp.bfloat16), 0)
    h = hidden(h, 1)
    latent = out_lin(h, 2)
    h = hidden(latent.astype(jnp.bfloat16), 3)
    h = hidden(h, 4)
    return latent, out_lin(h, 5)


def _reference_spec_forward(x, ref):
    """Faithful f32 eval-mode forward of the PyTorch module (Linear/BN/ReLU)."""
    def bn_block(h, i):
        h = h @ ref[f"w{i}"] + ref[f"b{i}"]
        h = h * ref[f"s{i}"] + ref[f"t{i}"]
        return jnp.maximum(h, 0.0)            # Dropout = identity in eval

    h = bn_block(x, 1)
    h = bn_block(h, 2)
    latent = h @ ref["w3"] + ref["b3"]
    h = bn_block(latent, 4)
    h = bn_block(h, 5)
    recon = h @ ref["w6"] + ref["b6"]
    return latent, recon


if __name__ == "__main__":
    B, INPUT_DIM, LATENT_DIM = 1024, 32, 8   # pack=4 -> 256 packed rows, grid=(2,)

    key = jax.random.PRNGKey(0)
    kx, kp = jax.random.split(key)
    x = jax.random.normal(kx, (B, INPUT_DIM), dtype=jnp.float32)
    params = make_params(kp, INPUT_DIM, LATENT_DIM, pack=4)

    latent, recon = jax.block_until_ready(autoencoder_forward(x, params))

    assert latent.shape == (B, LATENT_DIM) and recon.shape == (B, INPUT_DIM)

    pack = params["pack"]
    dims = tuple(params[f"w{i}"].shape[1] for i in range(1, 7))
    x_p = x.reshape(B // pack, pack * INPUT_DIM)
    lat_p_ref, rec_p_ref = _reference_kernel_math(x_p, params, dims)
    lat_bf16 = lat_p_ref.reshape(B, LATENT_DIM)
    rec_bf16 = rec_p_ref.reshape(B, INPUT_DIM)
    lat_f32, rec_f32 = _reference_spec_forward(x, params["ref"])

    # Tight check against the same bf16-weight / f32-accumulate packed math.
    assert jnp.allclose(latent, lat_bf16, atol=2e-2, rtol=2e-2)
    assert jnp.allclose(recon, rec_bf16, atol=2e-2, rtol=2e-2)
    # Looser check against the full-precision PyTorch-spec eval forward.
    assert jnp.allclose(latent, lat_f32, atol=1e-1, rtol=1e-1)
    assert jnp.allclose(recon, rec_f32, atol=1e-1, rtol=1e-1)

    print("KERNEL_OK")
</pallas_src>

<mosaic_0001>
module attributes {stable_mosaic.version = 11 : i64} {
  func.func @_ae_kernel(%arg0: i32, %arg1: memref<128x128xf32, #tpu.memory_space<vmem>>, %arg2: memref<128x128xbf16, #tpu.memory_space<vmem>>, %arg3: memref<128x64xbf16, #tpu.memory_space<vmem>>, %arg4: memref<64x32xbf16, #tpu.memory_space<vmem>>, %arg5: memref<32x64xbf16, #tpu.memory_space<vmem>>, %arg6: memref<64x128xbf16, #tpu.memory_space<vmem>>, %arg7: memref<128x128xbf16, #tpu.memory_space<vmem>>, %arg8: memref<8x128xf32, #tpu.memory_space<vmem>>, %arg9: memref<128x32xf32, #tpu.memory_space<vmem>>, %arg10: memref<128x128xf32, #tpu.memory_space<vmem>>) attributes {dimension_semantics = [#tpu.dimension_semantics<parallel>], iteration_bounds = array<i64: 2>, scalar_prefetch = 0 : i64, scratch_operands = 0 : i64, tpu.core_type = #tpu.core_type<tc>, window_params = [{transform_indices = @transform_0, window_bounds = array<i64: 128, 128>}, {pipeline_mode = #tpu.pipeline_mode<synchronous>, transform_indices = @transform_1, window_bounds = array<i64: 128, 128>}, {pipeline_mode = #tpu.pipeline_mode<synchronous>, transform_indices = @transform_2, window_bounds = array<i64: 128, 64>}, {pipeline_mode = #tpu.pipeline_mode<synchronous>, transform_indices = @transform_3, window_bounds = array<i64: 64, 32>}, {pipeline_mode = #tpu.pipeline_mode<synchronous>, transform_indices = @transform_4, window_bounds = array<i64: 32, 64>}, {pipeline_mode = #tpu.pipeline_mode<synchronous>, transform_indices = @transform_5, window_bounds = array<i64: 64, 128>}, {pipeline_mode = #tpu.pipeline_mode<synchronous>, transform_indices = @transform_6, window_bounds = array<i64: 128, 128>}, {pipeline_mode = #tpu.pipeline_mode<synchronous>, transform_indices = @transform_7, window_bounds = array<i64: 8, 128>}, {transform_indices = @transform_8, window_bounds = array<i64: 128, 32>}, {transform_indices = @transform_9, window_bounds = array<i64: 128, 128>}]} {
    %c0 = arith.constant 0 : index
    %c0_0 = arith.constant 0 : index
    %0 = vector.load %arg1[%c0, %c0_0] : memref<128x128xf32, #tpu.memory_space<vmem>>, vector<128x128xf32>
    %1 = arith.truncf %0 : vector<128x128xf32> to vector<128x128xbf16>
    %c0_1 = arith.constant 0 : index
    %c0_2 = arith.constant 0 : index
    %2 = vector.load %arg8[%c0_1, %c0_2] : memref<8x128xf32, #tpu.memory_space<vmem>>, vector<8x128xf32>
    %3 = arith.truncf %2 : vector<8x128xf32> to vector<8x128xbf16>
    %c0_3 = arith.constant 0 : index
    %c0_4 = arith.constant 0 : index
    %4 = vector.load %arg2[%c0_3, %c0_4] : memref<128x128xbf16, #tpu.memory_space<vmem>>, vector<128x128xbf16>
    %cst = arith.constant dense<0.000000e+00> : vector<128x128xf32>
    %5 = tpu.matmul %1, %4, %cst {dimension_numbers = #tpu.dot_dimension_numbers<[1], [0], [0], [1], [0, 0, 1, 1], [], []>} : vector<128x128xbf16>, vector<128x128xbf16>, vector<128x128xf32> -> vector<128x128xf32>
    %6 = arith.truncf %5 : vector<128x128xf32> to vector<128x128xbf16>
    %7 = vector.extract_strided_slice %3 {offsets = [0, 0], sizes = [1, 128], strides = [1, 1]} : vector<8x128xbf16> to vector<1x128xbf16>
    %8 = vector.shape_cast %7 : vector<1x128xbf16> to vector<128xbf16>
    %9 = vector.shape_cast %8 : vector<128xbf16> to vector<1x128xbf16>
    %10 = vector.broadcast %9 : vector<1x128xbf16> to vector<128x128xbf16>
    %11 = arith.addf %6, %10 : vector<128x128xbf16>
    %cst_5 = arith.constant 0.000000e+00 : bf16
    %12 = vector.broadcast %cst_5 : bf16 to vector<128x128xbf16>
    %13 = arith.maximumf %11, %12 : vector<128x128xbf16>
    %c0_6 = arith.constant 0 : index
    %c0_7 = arith.constant 0 : index
    %14 = vector.load %arg3[%c0_6, %c0_7] : memref<128x64xbf16, #tpu.memory_space<vmem>>, vector<128x64xbf16>
    %cst_8 = arith.constant dense<0.000000e+00> : vector<128x64xf32>
    %15 = tpu.matmul %13, %14, %cst_8 {dimension_numbers = #tpu.dot_dimension_numbers<[1], [0], [0], [1], [0, 0, 1, 1], [], []>} : vector<128x128xbf16>, vector<128x64xbf16>, vector<128x64xf32> -> vector<128x64xf32>
    %16 = arith.truncf %15 : vector<128x64xf32> to vector<128x64xbf16>
    %17 = vector.extract_strided_slice %3 {offsets = [1, 0], sizes = [1, 64], strides = [1, 1]} : vector<8x128xbf16> to vector<1x64xbf16>
    %18 = vector.shape_cast %17 : vector<1x64xbf16> to vector<64xbf16>
    %19 = vector.shape_cast %18 : vector<64xbf16> to vector<1x64xbf16>
    %20 = vector.broadcast %19 : vector<1x64xbf16> to vector<128x64xbf16>
    %21 = arith.addf %16, %20 : vector<128x64xbf16>
    %cst_9 = arith.constant 0.000000e+00 : bf16
    %22 = vector.broadcast %cst_9 : bf16 to vector<128x64xbf16>
    %23 = arith.maximumf %21, %22 : vector<128x64xbf16>
    %c0_10 = arith.constant 0 : index
    %c0_11 = arith.constant 0 : index
    %24 = vector.load %arg4[%c0_10, %c0_11] : memref<64x32xbf16, #tpu.memory_space<vmem>>, vector<64x32xbf16>
    %cst_12 = arith.constant dense<0.000000e+00> : vector<128x32xf32>
    %25 = tpu.matmul %23, %24, %cst_12 {dimension_numbers = #tpu.dot_dimension_numbers<[1], [0], [0], [1], [0, 0, 1, 1], [], []>} : vector<128x64xbf16>, vector<64x32xbf16>, vector<128x32xf32> -> vector<128x32xf32>
    %26 = vector.extract_strided_slice %2 {offsets = [2, 0], sizes = [1, 32], strides = [1, 1]} : vector<8x128xf32> to vector<1x32xf32>
    %27 = vector.shape_cast %26 : vector<1x32xf32> to vector<32xf32>
    %28 = vector.shape_cast %27 : vector<32xf32> to vector<1x32xf32>
    %29 = vector.broadcast %28 : vector<1x32xf32> to vector<128x32xf32>
    %30 = arith.addf %25, %29 : vector<128x32xf32>
    %c0_13 = arith.constant 0 : index
    %c0_14 = arith.constant 0 : index
    %31 = vector.load %arg9[%c0_13, %c0_14] : memref<128x32xf32, #tpu.memory_space<vmem>>, vector<128x32xf32>
    tpu.vector_store %arg9[%c0_13, %c0_14], %30 {strides = array<i32>} : memref<128x32xf32, #tpu.memory_space<vmem>>, vector<128x32xf32>,
    %32 = arith.truncf %30 : vector<128x32xf32> to vector<128x32xbf16>
    %c0_15 = arith.constant 0 : index
    %c0_16 = arith.constant 0 : index
    %33 = vector.load %arg5[%c0_15, %c0_16] : memref<32x64xbf16, #tpu.memory_space<vmem>>, vector<32x64xbf16>
    %cst_17 = arith.constant dense<0.000000e+00> : vector<128x64xf32>
    %34 = tpu.matmul %32, %33, %cst_17 {dimension_numbers = #tpu.dot_dimension_numbers<[1], [0], [0], [1], [0, 0, 1, 1], [], []>} : vector<128x32xbf16>, vector<32x64xbf16>, vector<128x64xf32> -> vector<128x64xf32>
    %35 = arith.truncf %34 : vector<128x64xf32> to vector<128x64xbf16>
    %36 = vector.extract_strided_slice %3 {offsets = [3, 0], sizes = [1, 64], strides = [1, 1]} : vector<8x128xbf16> to vector<1x64xbf16>
    %37 = vector.shape_cast %36 : vector<1x64xbf16> to vector<64xbf16>
    %38 = vector.shape_cast %37 : vector<64xbf16> to vector<1x64xbf16>
    %39 = vector.broadcast %38 : vector<1x64xbf16> to vector<128x64xbf16>
    %40 = arith.addf %35, %39 : vector<128x64xbf16>
    %cst_18 = arith.constant 0.000000e+00 : bf16
    %41 = vector.broadcast %cst_18 : bf16 to vector<128x64xbf16>
    %42 = arith.maximumf %40, %41 : vector<128x64xbf16>
    %c0_19 = arith.constant 0 : index
    %c0_20 = arith.constant 0 : index
    %43 = vector.load %arg6[%c0_19, %c0_20] : memref<64x128xbf16, #tpu.memory_space<vmem>>, vector<64x128xbf16>
    %cst_21 = arith.constant dense<0.000000e+00> : vector<128x128xf32>
    %44 = tpu.matmul %42, %43, %cst_21 {dimension_numbers = #tpu.dot_dimension_numbers<[1], [0], [0], [1], [0, 0, 1, 1], [], []>} : vector<128x64xbf16>, vector<64x128xbf16>, vector<128x128xf32> -> vector<128x128xf32>
    %45 = arith.truncf %44 : vector<128x128xf32> to vector<128x128xbf16>
    %46 = vector.extract_strided_slice %3 {offsets = [4, 0], sizes = [1, 128], strides = [1, 1]} : vector<8x128xbf16> to vector<1x128xbf16>
    %47 = vector.shape_cast %46 : vector<1x128xbf16> to vector<128xbf16>
    %48 = vector.shape_cast %47 : vector<128xbf16> to vector<1x128xbf16>
    %49 = vector.broadcast %48 : vector<1x128xbf16> to vector<128x128xbf16>
    %50 = arith.addf %45, %49 : vector<128x128xbf16>
    %cst_22 = arith.constant 0.000000e+00 : bf16
    %51 = vector.broadcast %cst_22 : bf16 to vector<128x128xbf16>
    %52 = arith.maximumf %50, %51 : vector<128x128xbf16>
    %c0_23 = arith.constant 0 : index
    %c0_24 = arith.constant 0 : index
    %53 = vector.load %arg7[%c0_23, %c0_24] : memref<128x128xbf16, #tpu.memory_space<vmem>>, vector<128x128xbf16>
    %cst_25 = arith.constant dense<0.000000e+00> : vector<128x128xf32>
    %54 = tpu.matmul %52, %53, %cst_25 {dimension_numbers = #tpu.dot_dimension_numbers<[1], [0], [0], [1], [0, 0, 1, 1], [], []>} : vector<128x128xbf16>, vector<128x128xbf16>, vector<128x128xf32> -> vector<128x128xf32>
    %55 = vector.extract_strided_slice %2 {offsets = [5, 0], sizes = [1, 128], strides = [1, 1]} : vector<8x128xf32> to vector<1x128xf32>
    %56 = vector.shape_cast %55 : vector<1x128xf32> to vector<128xf32>
    %57 = vector.shape_cast %56 : vector<128xf32> to vector<1x128xf32>
    %58 = vector.broadcast %57 : vector<1x128xf32> to vector<128x128xf32>
    %59 = arith.addf %54, %58 : vector<128x128xf32>
    %c0_26 = arith.constant 0 : index
    %c0_27 = arith.constant 0 : index
    %60 = vector.load %arg10[%c0_26, %c0_27] : memref<128x128xf32, #tpu.memory_space<vmem>>, vector<128x128xf32>
    tpu.vector_store %arg10[%c0_26, %c0_27], %59 {strides = array<i32>} : memref<128x128xf32, #tpu.memory_space<vmem>>, vector<128x128xf32>,
    return
  }
  func.func @transform_0(%arg0: i32) -> (i32, i32) {
    %c0_i32 = arith.constant 0 : i32
    %c0_i32_0 = arith.constant 0 : i32
    return %arg0, %c0_i32 : i32, i32
  }
  func.func @transform_1(%arg0: i32) -> (i32, i32) {
    %c0_i32 = arith.constant 0 : i32
    %c0_i32_0 = arith.constant 0 : i32
    %c0_i32_1 = arith.constant 0 : i32
    return %c0_i32, %c0_i32_0 : i32, i32
  }
  func.func @transform_2(%arg0: i32) -> (i32, i32) {
    %c0_i32 = arith.constant 0 : i32
    %c0_i32_0 = arith.constant 0 : i32
    %c0_i32_1 = arith.constant 0 : i32
    return %c0_i32, %c0_i32_0 : i32, i32
  }
  func.func @transform_3(%arg0: i32) -> (i32, i32) {
    %c0_i32 = arith.constant 0 : i32
    %c0_i32_0 = arith.constant 0 : i32
    %c0_i32_1 = arith.constant 0 : i32
    return %c0_i32, %c0_i32_0 : i32, i32
  }
  func.func @transform_4(%arg0: i32) -> (i32, i32) {
    %c0_i32 = arith.constant 0 : i32
    %c0_i32_0 = arith.constant 0 : i32
    %c0_i32_1 = arith.constant 0 : i32
    return %c0_i32, %c0_i32_0 : i32, i32
  }
  func.func @transform_5(%arg0: i32) -> (i32, i32) {
    %c0_i32 = arith.constant 0 : i32
    %c0_i32_0 = arith.constant 0 : i32
    %c0_i32_1 = arith.constant 0 : i32
    return %c0_i32, %c0_i32_0 : i32, i32
  }
  func.func @transform_6(%arg0: i32) -> (i32, i32) {
    %c0_i32 = arith.constant 0 : i32
    %c0_i32_0 = arith.constant 0 : i32
    %c0_i32_1 = arith.constant 0 : i32
    return %c0_i32, %c0_i32_0 : i32, i32
  }
  func.func @transform_7(%arg0: i32) -> (i32, i32) {
    %c0_i32 = arith.constant 0 : i32
    %c0_i32_0 = arith.constant 0 : i32
    %c0_i32_1 = arith.constant 0 : i32
    return %c0_i32, %c0_i32_0 : i32, i32
  }
  func.func @transform_8(%arg0: i32) -> (i32, i32) {
    %c0_i32 = arith.constant 0 : i32
    %c0_i32_0 = arith.constant 0 : i32
    return %arg0, %c0_i32 : i32, i32
  }
  func.func @transform_9(%arg0: i32) -> (i32, i32) {
    %c0_i32 = arith.constant 0 : i32
    %c0_i32_0 = arith.constant 0 : i32
    return %arg0, %c0_i32 : i32, i32
  }
}

</mosaic_0001>

<bundles_post_ra>
// kernel: tpu_custom_call.1
= control target key start
LH: loop header
LB: loop body
LE: loop exit
PB: predicated region body
PF: predicated region fallthrough
CT: control target
= control target key end

     0   :  { %15 = vsyncpa [#allocation3], 0  ;;  %s2714_s0 = inlined_call_operand.hbm [shape: f32[256,128], index: 0, kind: input, shape index: {}]   ;;  %s2715_s1 = inlined_call_operand.vmem [shape: bf16[128,128], index: 1, kind: input, shape index: {}]   ;;  %s2716_s2 = inlined_call_operand.vmem [shape: bf16[128,64], index: 2, kind: input, shape index: {}]   ;;  %s2717_s3 = inlined_call_operand.vmem [shape: bf16[64,32], index: 3, kind: input, shape index: {}]   ;;  %s2718_s4 = inlined_call_operand.hbm [shape: bf16[32,64], index: 4, kind: input, shape index: {}]   ;;  %s2719_s5 = inlined_call_operand.vmem [shape: bf16[64,128], index: 5, kind: input, shape index: {}]   ;;  %s2720_s6 = inlined_call_operand.vmem [shape: bf16[128,128], index: 6, kind: input, shape index: {}]   ;;  %s2721_s7 = inlined_call_operand.vmem [shape: f32[8,128], index: 7, kind: input, shape index: {}]   ;;  %s2722_s8 = inlined_call_operand.vmem [shape: f32[256,32], index: 8, kind: output, shape index: {0}]   ;;  %s2723_s9 = inlined_call_operand.hbm [shape: f32[256,128], index: 9, kind: output, shape index: {1}]  }
   0x1   :  { %17 = vsyncpa [#allocation3 + $0x1], 0 }
   0x2   :  { %18 = vsyncpa [#allocation6], 0 }
   0x3   :  { %19 = vsyncpa [#allocation4], 0 }
   0x4   :  { %21 = vsyncpa [#allocation4 + $0x1], 0  ;;  %s2246_s30 = smov 0   ;;  %s2248_s10 = smov 0  }
   0x5   :  { %s2250_s11 = smov 0   ;;  %s2252_s12 = smov 0  }
   0x6 LB: > { %s2267_s13 = sadd.s32 4294967295, %s2184_s12   ;;  %s1634_s14 = sadd.s32 4294967294, %s2184_s12   ;;  %s2184_s12 = sphi %s2252_s12, %s2746_s12   ;;  %s2180_s11 = sphi %s2250_s11, %s2749_s11   ;;  %s2176_s10 = sphi %s2248_s10, %s2748_s10   ;;  %s2172_s30 = sphi %s2246_s30, %s2747_s30  }
   0x7   : > { %p47_p0 = scmp.ne.s32.totalorder %s2176_s10, %s2172_s30  ;;  %p2724_p1 = scmp.eq.s32.totalorder %s2267_s13, 0 }
   0x8   : > { %p250_p3 = scmp.eq.s32.totalorder %s1634_s14, 1  ;;  %p1635_p5 = scmp.ge.s32.totalorder %s2184_s12, 1 }
   0x9   : > { %p2276_p4 = por %p2724_p1, %p47_p0  ;;  %p257_p7 = scmp.lt.s32.totalorder %s2184_s12, 3 }
   0xa   : > { %p2281_p6 = por %p250_p3, %p47_p0  ;;  %s2186_s18 = smov [#allocation5]  }
   0xb   : > { %s2730_s15 = scalar_select %p2276_p4, 1, 0 }
   0xc   : > { %s2731_s16 = scalar_select %p2281_p6, 1, 0 }
   0xd   : > { %p2286_p8 = pnand %p1635_p5, %p257_p7  ;;  %s278_s19 = sshll.u32 %s2186_s18, 4  ;;  %s2290_s19 = int_to_ptr.vmem [resolvable:$true] %s278_s19 }
   0xe   : > { %2732 = sst [smem:[#allocation11_spill]] %s2731_s16  ;;  %s2302_s21 = sadd.s32 1, %s2184_s12  }
   0xf   : > { %s2733_s17 = scalar_select %p2286_p8, 1, 0 }
  0x10   : > { %p1966_p9 = pneg %p2286_p8  ;;  %2735 = sst [smem:[#allocation12_spill]] %s2302_s21 }
  0x11   : > { %s34_s22 = sadd.s32 1, %s2180_s11  ;;  %s31_s23 = ssub.s32 %s2184_s12, %s2302_s21 }
  0x12   : > { %p2297_p11 = pnand %p1966_p9, %p2724_p1  ;;  %s2056_s26 = scalar_lea.hbm %s2718_s4, 256 }
  0x13   : > { %p2057_p12 = scmp.ne.s32.totalorder %s2718_s4, %s2056_s26  ;;  %p2063_p5 = scmp.lt.u32.totalorder %s2056_s26, %s2718_s4 }
  0x14   : > { %p2058_p13 = pneg %p2297_p11 }
  0x16   : > { %p2059_p0 = pnand %p2058_p13, %p2057_p12 }
  0x18   : > { %p2060_p3 = pneg %p2059_p0 }
  0x1a   : > { %p2065_p7 = pnand %p2063_p5, %p2060_p3 }
  0x1c   : > { %2068 = shalt.err (!%p2065_p7)
}
  0x1d   : > { %s2069_s18 = scalar_lea.vmem %s2290_s19, 256  ;;  %p2077_p2 = scmp.lt.s32.totalorder %s2290_s19, %s2290_s19 }
  0x1e   : > { %p2070_p9 = scmp.ne.s32.totalorder %s2290_s19, %s2069_s18  ;;  %p2078_p6 = scmp.lt.s32.totalorder %s2069_s18, %s2069_s18 }
  0x20   : > { %p2072_p10 = pnand %p2070_p9, %p2058_p13  ;;  %p2079_p4 = por %p2078_p6, %p2077_p2 }
  0x22   : > { %p2073_p1 = pneg %p2072_p10 }
  0x24   : > { %p2080_p8 = pnand %p2079_p4, %p2073_p1 }
  0x26   : > { %2083 = shalt.err (!%p2080_p8)
}
  0x27   : > { %s2187_s24 = smov 64   ;;  %s2188_s25 = smov 4  }
  0x28   : > { %1969 = dma.hbm_to_vmem [thread:$0]  (!%p2297_p11), %s2718_s4, 256, %s2290_s19, [#allocation6], %s2187_s24, %s2187_s24, %s2188_s25  }
  0x29   : > { %p32_p2 = scmp.eq.s32.totalorder %s31_s23, 0  ;;  %p41_p1 = scmp.ne.s32.totalorder %s2180_s11, %s2176_s10 }
  0x2a   : > { %p42_p4 = scmp.eq.s32.totalorder %s2184_s12, 0  ;;  %p1979_p6 = scmp.lt.s32.totalorder %s2184_s12, 2 }
  0x2b   : > { %s2333_s28 = scalar_select %p32_p2, %s2180_s11, %s34_s22  }
  0x2c   : > { %p43_p8 = por %p42_p4, %p41_p1  ;;  %p2736_p10 = scmp.eq.s32.totalorder %s2267_s13, 1 }
  0x2d   : > { %s301_s14 = sand.u32 1, %s2180_s11   ;;  %s1710_s18 = sshll.u32 %s2184_s12, 11 }
  0x2e   : > { %p2337_p12 = por %p2736_p10, %p41_p1  ;;  %s1638_s21 = sshll.u32 %s301_s14, 7 }
  0x2f   : > { %s2346_s26 = scalar_lea.hbm %s2714_s0, %s1710_s18  ;;  %s305_s19 = scalar_lea.vmem [#allocation2], %s1638_s21 }
  0x30   : > { %s312_s22 = sshll.u32 %s305_s19, 4  ;;  %p2348_p11 = pnand %p1979_p6, %p43_p8  ;;  %s2352_s22 = int_to_ptr.vmem [resolvable:$true] %s312_s22 }
  0x31   : > { %s2354_s24 = scalar_lea.sflag [#allocation3], %s301_s14  ;;  %s2084_s25 = scalar_lea.hbm %s2346_s26, 2048 }
  0x32   : > { %p2085_p13 = scmp.ne.s32.totalorder %s2346_s26, %s2084_s25  ;;  %p2086_p0 = pneg %p2348_p11 }
  0x33   : > { %s2089_s27 = scalar_lea.hbm %s2714_s0, 4096  ;;  %p2090_p7 = scmp.lt.u32.totalorder %s2346_s26, %s2714_s0 }
  0x34   : > { %p2087_p3 = pnand %p2086_p0, %p2085_p13  ;;  %p2091_p9 = scmp.lt.u32.totalorder %s2089_s27, %s2084_s25 }
  0x35   : > { %p2093_p1 = scmp.lt.u32.totalorder %s2084_s25, %s2346_s26 }
  0x36   : > { %p2088_p5 = pneg %p2087_p3  ;;  %p2092_p2 = por %p2091_p9, %p2090_p7 }
  0x38   : > { %p2094_p4 = por %p2093_p1, %p2092_p2 }
  0x3a   : > { %p2095_p6 = pnand %p2094_p4, %p2088_p5 }
  0x3c   : > { %2098 = shalt.err (!%p2095_p6)
}
  0x3d   : > { %s2099_s14 = scalar_lea.vmem %s2352_s22, 2048  ;;  %s2189_s19 = smov [#allocation2]  }
  0x3e   : > { %p2100_p8 = scmp.ne.s32.totalorder %s2352_s22, %s2099_s14  ;;  %s2104_s16 = sshll.u32 %s2189_s19, 4  ;;  %s2105_s16 = int_to_ptr.vmem [resolvable:$false] %s2104_s16 }
  0x3f   : > { %s2106_s21 = scalar_lea.vmem %s2105_s16, 4096  ;;  %p2107_p3 = scmp.lt.s32.totalorder %s2352_s22, %s2105_s16 }
  0x40   : > { %p2102_p10 = pnand %p2100_p8, %p2086_p0  ;;  %p2108_p7 = scmp.lt.s32.totalorder %s2106_s21, %s2099_s14 }
  0x42   : > { %p2103_p13 = pneg %p2102_p10  ;;  %p2109_p9 = por %p2108_p7, %p2107_p3 }
  0x44   : > { %p2110_p2 = pnand %p2109_p9, %p2103_p13 }
  0x46   : > { %2113 = shalt.err (!%p2110_p2)
}
  0x47   : > { %s2190_s25 = smov 128   ;;  %s2191_s27 = smov 8  }
  0x48   : > { %1973 = dma.hbm_to_vmem [thread:$0]  (!%p2348_p11), %s2346_s26, 2048, %s2352_s22, %s2354_s24, %s2190_s25, %s2190_s25, %s2191_s27  }
  0x49   : > { %p2739_p0 = scmp.ne.s32.totalorder %s2733_s17, 0 }
  0x4a   : > { %s2385_s18 = sand.u32 (!%p2739_p0), 1, %s2176_s10   ;;  %p2740_p5 = scmp.ne.s32.totalorder (!%p2739_p0), %s2730_s15, 0 }
  0x4b   : > { %324 = sbr.rel (%p2739_p0) target bundleno = 1483 (0x5cb), region = 52  ;;  %s1642_s20 = sshll.u32 (!%p2739_p0), %s2385_s18, 7 }
  0x4c   : > { %s327_s14 = scalar_lea.sflag (!%p2739_p0), [#allocation3], %s2385_s18  ;;  %s2391_s19 = scalar_lea.vmem (!%p2739_p0), [#allocation2], %s1642_s20 }
  0x52   : > { %2159 = dma.done.wait (%p2740_p5), %s327_s14, 2048  }
  0x53   : > { %2161 = vsyncadd (%p2740_p5), %s327_s14, 4294965248  ;;  %p2741_p11 = scmp.eq.s32.totalorder %s2267_s13, 0 }
  0x55   : > { %2163 = dma.done.wait (%p2741_p11), [#allocation6], 256   ;;  %p2742_p1 = pmov %p2741_p11 }
  0x56   : > { %v2022_v0 = vld [vmem:[%s2715_s1] sm:$0xff]   ;;  %v2023_v1 = vld [vmem:[%s2715_s1 + $0x8] sm:$0xff]   ;;  %v2024_v2 = vld [vmem:[%s2715_s1 + $0x10] sm:$0xff]   ;;  %v581_v43 = vlaneseq  ;;  %v2192_v59 = vmov 0   ;;  %vm829_vm0 = vcmask 523264   ;;  %s1645_s22 = sshll.u32 %s2267_s13, 4 }
  0x57   : > { %2165 = vsyncadd (%p2742_p1), [#allocation6], 4294967040  ;;  %1794 = vmatprep.subr.bf16.mxu0 %v2022_v0  ;;  %v2025_v3 = vld [vmem:[%s2715_s1 + $0x18] sm:$0xff]   ;;  %v383_v4 = vld [vmem:[%s2391_s19] sm:$0xff]  ;;  %p376_p4 = scmp.lt.s32.totalorder %s1645_s22, 31  ;;  %vm951_vm1 = vcmask 261120  }
  0x58   : > { %1795 = vmatpush3.bf16.msra.mxu0 %v2022_v0  ;;  %v384_v5 = vld [vmem:[%s2391_s19 + $0x8] sm:$0xff]  ;;  %v2026_v7 = vld [vmem:[%s2715_s1 + $0x20] sm:$0xff]   ;;  %v2032_v11 = vld [vmem:[%s2716_s2 + $0x10] sm:$0xff]   ;;  %v2483_v46 = vshrl.u32 %v581_v43, 7  ;;  %s2193_s21 = smov [#allocation7]  }
  0x59   : > { %1796 = vmatprep.subr.bf16.mxu0 %v2023_v1  ;;  %v399_v6 = vpack.c.bf16 %v384_v5, %v383_v4  ;;  %v2030_v8 = vld [vmem:[%s2716_s2] sm:$0xff]   ;;  %v2031_v9 = vld [vmem:[%s2716_s2 + $0x8] sm:$0xff]   ;;  %v2028_v12 = vld [vmem:[%s2715_s1 + $0x30] sm:$0xff]   ;;  %s2751_s22 = smov (!%p376_p4, %s1645_s22), 31  ;;  %s2118_s25 = sshll.u32 %s2193_s21, 4  ;;  %s2119_s25 = int_to_ptr.vmem [resolvable:$false] %s2118_s25 }
  0x5a   : > { %v2027_v10 = vld [vmem:[%s2715_s1 + $0x28] sm:$0xff]   ;;  %1826 = vmatprep.subr.bf16.mxu1 %v2030_v8  ;;  %v2033_v13 = vld [vmem:[%s2716_s2 + $0x18] sm:$0xff]   ;;  %v2034_v15 = vld [vmem:[%s2716_s2 + $0x20] sm:$0xff]   ;;  %v583_v48 = vsub.s32 0, %v2483_v46  ;;  %s1646_s23 = sshll.u32 %s2751_s22, 3  ;;  %s2120_s27 = scalar_lea.vmem %s2119_s25, 4096 }
  0x5b   : > { %1810 = vmatprep.mubr.bf16.mxu0 %v399_v6  ;;  %1827 = vmatpush3.bf16.msra.mxu1 %v2030_v8  ;;  %v2029_v14 = vld [vmem:[%s2715_s1 + $0x38] sm:$0xff]   ;;  %v385_v16 = vld [vmem:[%s2391_s19 + $0x10] sm:$0xff]  ;;  %v387_v18 = vld [vmem:[%s2391_s19 + $0x20] sm:$0xff]  ;;  %s2543_s16 = scalar_lea.vmem %s2722_s8, %s1646_s23 }
  0x5c   : > { %1797 = vmatpush3.bf16.msra.mxu0 %v2023_v1  ;;  %1828 = vmatprep.subr.bf16.mxu1 %v2031_v9  ;;  %v386_v17 = vld [vmem:[%s2391_s19 + $0x18] sm:$0xff]  ;;  %v388_v19 = vld [vmem:[%s2391_s19 + $0x28] sm:$0xff]  ;;  %v389_v23 = vld [vmem:[%s2391_s19 + $0x30] sm:$0xff] }
  0x5d   : > { %1798 = vmatprep.subr.bf16.mxu0 %v2024_v2  ;;  %v2035_v20 = vld [vmem:[%s2716_s2 + $0x28] sm:$0xff]   ;;  %v400_v21 = vpack.c.bf16 %v386_v17, %v385_v16  ;;  %v401_v22 = vpack.c.bf16 %v388_v19, %v387_v18  ;;  %v390_v24 = vld [vmem:[%s2391_s19 + $0x38] sm:$0xff]  ;;  %v391_v25 = vld [vmem:[%s2391_s19 + $0x40] sm:$0xff] }
  0x5e   : > { %v392_v26 = vld [vmem:[%s2391_s19 + $0x48] sm:$0xff]  ;;  %v402_v27 = vpack.c.bf16 %v390_v24, %v389_v23  ;;  %v393_v29 = vld [vmem:[%s2391_s19 + $0x50] sm:$0xff]  ;;  %v394_v30 = vld [vmem:[%s2391_s19 + $0x58] sm:$0xff] }
  0x5f   : > { %1829 = vmatpush3.bf16.msra.mxu1 %v2031_v9  ;;  %v403_v28 = vpack.c.bf16 %v392_v26, %v391_v25  ;;  %v395_v31 = vld [vmem:[%s2391_s19 + $0x60] sm:$0xff]  ;;  %v396_v32 = vld [vmem:[%s2391_s19 + $0x68] sm:$0xff]  ;;  %v404_v33 = vpack.c.bf16 %v394_v30, %v393_v29  ;;  %v397_v35 = vld [vmem:[%s2391_s19 + $0x70] sm:$0xff] }
  0x60   : > { %1799 = vmatpush3.bf16.msra.mxu0 %v2024_v2  ;;  %1830 = vmatprep.subr.bf16.mxu1 %v2032_v11  ;;  %v405_v34 = vpack.c.bf16 %v396_v32, %v395_v31  ;;  %v398_v36 = vld [vmem:[%s2391_s19 + $0x78] sm:$0xff]  ;;  %v2036_v38 = vld [vmem:[%s2716_s2 + $0x30] sm:$0xff]   ;;  %v2038_v40 = vld [vmem:[%s2717_s3] sm:$0xff]   ;;  %s2645_s19 = scalar_lea.vmem [#allocation7], %s1642_s20  ;;  %s1711_s20 = sshll.u32 %s2267_s13, 11 }
  0x61   : > { %1800 = vmatprep.subr.bf16.mxu0 %v2025_v3  ;;  %v406_v37 = vpack.c.bf16 %v398_v36, %v397_v35  ;;  %v2037_v39 = vld [vmem:[%s2716_s2 + $0x38] sm:$0xff]   ;;  %v2039_v41 = vld [vmem:[%s2717_s3 + $0x8] sm:$0xff]   ;;  %v2040_v42 = vld [vmem:[%s2717_s3 + $0x10] sm:$0xff]   ;;  %s1526_s22 = sshll.u32 %s2645_s19, 4  ;;  %s2665_s24 = scalar_lea.hbm %s2723_s9, %s1711_s20  ;;  %s2667_s22 = int_to_ptr.vmem [resolvable:$true] %s1526_s22 }
  0x62   : > { %v2477_v44 = vld [vmem:[%s2721_s7] sm:$0xff]  ;;  %v2043_v29 = vld [vmem:[#allocation5 + $0x8] sm:$0xff]   ;;  %s1509_s13 = scalar_lea.sflag [#allocation4], %s2385_s18  ;;  %p2121_p13 = scmp.lt.s32.totalorder %s2667_s22, %s2119_s25 }
  0x63   : > { %1831 = vmatpush3.bf16.msra.mxu1 %v2032_v11  ;;  %v2481_v45 = vpack.c.bf16 %v2477_v44, %v2477_v44 }
  0x64   : > { %1801 = vmatpush3.bf16.msra.mxu0 %v2025_v3  ;;  %1832 = vmatprep.subr.bf16.mxu1 %v2033_v13 }
  0x65   : > { %1802 = vmatprep.subr.bf16.mxu0 %v2026_v7  ;;  %v2487_v47 = vpack.i.b16 %v2481_v45, %v2481_v45  ;;  %v770_v30 = vshrl.u32 %v2481_v45, 16 }
  0x67   : > { %1833 = vmatpush3.bf16.msra.mxu1 %v2033_v13  ;;  %v584_v51 = vrot.slane %v2487_v47, %v583_v48  ;;  %v2505_v31 = vpack.i.b16 %v770_v30, %v770_v30 }
  0x68   : > { %1803 = vmatpush3.bf16.msra.mxu0 %v2026_v7  ;;  %1834 = vmatprep.subr.bf16.mxu1 %v2034_v15 }
  0x69   : > { %1804 = vmatprep.subr.bf16.mxu0 %v2027_v10 }
  0x6b   : > { %1835 = vmatpush3.bf16.msra.mxu1 %v2034_v15 }
  0x6c   : > { %1805 = vmatpush3.bf16.msra.mxu0 %v2027_v10  ;;  %1836 = vmatprep.subr.bf16.mxu1 %v2035_v20 }
  0x6d   : > { %1806 = vmatprep.subr.bf16.mxu0 %v2028_v12 }
  0x6f   : > { %1837 = vmatpush3.bf16.msra.mxu1 %v2035_v20 }
  0x70   : > { %1807 = vmatpush3.bf16.msra.mxu0 %v2028_v12  ;;  %1838 = vmatprep.subr.bf16.mxu1 %v2036_v38 }
  0x71   : > { %1808 = vmatprep.subr.bf16.mxu0 %v2029_v14 }
  0x73   : > { %1839 = vmatpush3.bf16.msra.mxu1 %v2036_v38 }
  0x74   : > { %1809 = vmatpush3.bf16.msra.mxu0 %v2029_v14  ;;  %1840 = vmatprep.subr.bf16.mxu1 %v2037_v39 }
  0x75   : > { %1858 = vmatprep.subr.bf16.mxu0 %v2038_v40 }
  0x77   : > { %1811 = vmatmul.mubr.bf16.vlgmr.msra.gmra.mrb[0].mxu0 %v400_v21  ;;  %1841 = vmatpush3.bf16.msra.mxu1 %v2037_v39 }
  0x78   : > { %1814 = vmatprep.mubr.bf16.mxu0 %v401_v22  ;;  %1859 = vmatpush3.bf16.msra.mxu0 %v2038_v40 }
  0x79   : > { %1860 = vmatprep.subr.bf16.mxu0 %v2039_v41 }
  0x7c   : > { %1861 = vmatpush3.bf16.msra.mxu0 %v2039_v41 }
  0x7d   : > { %1862 = vmatprep.subr.bf16.mxu0 %v2040_v42 }
  0x7f   : > { %1815 = vmatmul.mubr.bf16.gmra.mrb[4].mxu0 %v402_v27  ;;  %v2041_v27 = vld [vmem:[%s2717_s3 + $0x18] sm:$0xff]  }
  0x80   : > { %1818 = vmatprep.mubr.bf16.mxu0 %v403_v28  ;;  %1863 = vmatpush3.bf16.msra.mxu0 %v2040_v42  ;;  %v2042_v28 = vld [vmem:[#allocation5] sm:$0xff]  }
  0x81   : > { %1864 = vmatprep.subr.bf16.mxu0 %v2041_v27  ;;  %1882 = vmatprep.subr.bf16.mxu1 %v2042_v28 }
  0x84   : > { %1865 = vmatpush3.bf16.msra.mxu0 %v2041_v27 }
  0x87   : > { %1819 = vmatmul.mubr.bf16.gmra.mrb[8].mxu0 %v404_v33 }
  0x88   : > { %1822 = vmatprep.mubr.bf16.mxu0 %v405_v34  ;;  %v776_v34 = vrot.slane %v2505_v31, %v583_v48 }
  0x8f   : > { %1823 = vmatmul.mubr.bf16.gmra.mrb[12].mxu0 %v406_v37 }
 0x14a   : > { %v1812_v49 = vpop.f32.mrb[0].mxu0 }
 0x14b   : > { %v507_v50 = vpop.f32.mrb[1].mxu0 }
 0x14c   : > { %v1813_v52 = vpop.f32.mrb[2].mxu0 }
 0x14d   : > { %v571_v53 = vpack.c.bf16 %v1813_v52, %v1812_v49  ;;  %v510_v54 = vpop.f32.mrb[3].mxu0 }
 0x14e   : > { %v570_v55 = vpack.c.bf16 %v510_v54, %v507_v50 }
 0x14f   : > { %v586_v56 = vadd.bf16 %v584_v51, %v571_v53 }
 0x150   : > { %v585_v57 = vadd.bf16 %v584_v51, %v570_v55 }
 0x151   : > { %v594_v62 = vmax.bf16 %v2192_v59, %v586_v56 }
 0x152   : > { %v1816_v58 = vpop.f32.mrb[4].mxu0  ;;  %v593_v60 = vmax.bf16 %v2192_v59, %v585_v57 }
 0x153   : > { %v523_v61 = vpop.f32.mrb[5].mxu0 }
 0x154   : > { %v1817_v63 = vpop.f32.mrb[6].mxu0  ;;  %1842 = vmatprep.mubr.bf16.mxu1 %v593_v60 }
 0x155   : > { %v573_v0 = vpack.c.bf16 %v1817_v63, %v1816_v58  ;;  %v526_v1 = vpop.f32.mrb[7].mxu0  ;;  %1843 = vmatmul.mubr.bf16.vlgmr.msra.gmra.mrb[0].mxu1 %v594_v62 }
 0x156   : > { %v572_v2 = vpack.c.bf16 %v526_v1, %v523_v61  ;;  %1883 = vmatpush3.bf16.msra.mxu1 %v2042_v28 }
 0x157   : > { %v588_v3 = vadd.bf16 %v584_v51, %v573_v0  ;;  %1884 = vmatprep.subr.bf16.mxu1 %v2043_v29 }
 0x158   : > { %v587_v4 = vadd.bf16 %v584_v51, %v572_v2 }
 0x159   : > { %v596_v8 = vmax.bf16 %v2192_v59, %v588_v3 }
 0x15a   : > { %v1820_v5 = vpop.f32.mrb[8].mxu0  ;;  %v595_v6 = vmax.bf16 %v2192_v59, %v587_v4  ;;  %1885 = vmatpush3.bf16.msra.mxu1 %v2043_v29 }
 0x15b   : > { %v539_v7 = vpop.f32.mrb[9].mxu0 }
 0x15c   : > { %v1821_v9 = vpop.f32.mrb[10].mxu0  ;;  %1846 = vmatprep.mubr.bf16.mxu1 %v595_v6 }
 0x15d   : > { %v575_v10 = vpack.c.bf16 %v1821_v9, %v1820_v5  ;;  %v542_v11 = vpop.f32.mrb[11].mxu0  ;;  %1847 = vmatmul.mubr.bf16.gmra.mrb[4].mxu1 %v596_v8 }
 0x15e   : > { %v574_v12 = vpack.c.bf16 %v542_v11, %v539_v7 }
 0x15f   : > { %v590_v13 = vadd.bf16 %v584_v51, %v575_v10 }
 0x160   : > { %v589_v14 = vadd.bf16 %v584_v51, %v574_v12 }
 0x161   : > { %v598_v18 = vmax.bf16 %v2192_v59, %v590_v13  ;;  %v2044_v13 = vld [vmem:[%s2719_s5] sm:$0xff]  }
 0x162   : > { %v1824_v15 = vpop.f32.mrb[12].mxu0  ;;  %v597_v16 = vmax.bf16 %v2192_v59, %v589_v14  ;;  %v2045_v14 = vld [vmem:[%s2719_s5 + $0x8] sm:$0xff]   ;;  %1902 = vmatprep.subr.bf16.mxu0 %v2044_v13 }
 0x163   : > { %v555_v17 = vpop.f32.mrb[13].mxu0 }
 0x164   : > { %v1825_v19 = vpop.f32.mrb[14].mxu0  ;;  %1850 = vmatprep.mubr.bf16.mxu1 %v597_v16  ;;  %v803_v16 = vsub.s32 2, %v2483_v46 }
 0x165   : > { %v577_v20 = vpack.c.bf16 %v1825_v19, %v1824_v15  ;;  %v558_v21 = vpop.f32.mrb[15].mxu0  ;;  %1851 = vmatmul.mubr.bf16.gmra.mrb[8].mxu1 %v598_v18  ;;  %v2046_v15 = vld [vmem:[%s2719_s5 + $0x10] sm:$0xff]  }
 0x166   : > { %v576_v22 = vpack.c.bf16 %v558_v21, %v555_v17  ;;  %v804_v17 = vrot.slane %v2477_v44, %v803_v16 }
 0x167   : > { %v592_v23 = vadd.bf16 %v584_v51, %v577_v20 }
 0x168   : > { %v591_v24 = vadd.bf16 %v584_v51, %v576_v22 }
 0x169   : > { %v600_v26 = vmax.bf16 %v2192_v59, %v592_v23 }
 0x16a   : > { %v599_v25 = vmax.bf16 %v2192_v59, %v591_v24 }
 0x16c   : > { %1854 = vmatprep.mubr.bf16.mxu1 %v599_v25 }
 0x16d   : > { %1855 = vmatmul.mubr.bf16.gmra.mrb[12].mxu1 %v600_v26 }
 0x228   : > { %v1844_v32 = vpop.f32.mrb[0].mxu1 }
 0x229   : > { %v699_v33 = vpop.f32.mrb[1].mxu1 }
 0x22a   : > { %v1845_v35 = vpop.f32.mrb[2].mxu1 }
 0x22b   : > { %v763_v36 = vpack.c.bf16 %v1845_v35, %v1844_v32  ;;  %v702_v37 = vpop.f32.mrb[3].mxu1 }
 0x22c   : > { %v762_v38 = vpack.c.bf16 %v702_v37, %v699_v33 }
 0x22d   : > { %v778_v39 = vadd.bf16 %v776_v34, %v763_v36 }
 0x22e   : > { %v777_v40 = vadd.bf16 %v776_v34, %v762_v38 }
 0x22f   : > { %v786_v43 = vmax.bf16 %v2192_v59, %v778_v39 }
 0x230   : > { %v785_v41 = vmax.bf16 %v2192_v59, %v777_v40  ;;  %v1848_v42 = vpop.f32.mrb[4].mxu1 }
 0x231   : > { %v715_v45 = vpop.f32.mrb[5].mxu1 }
 0x232   : > { %v1849_v49 = vpop.f32.mrb[6].mxu1  ;;  %1866 = vmatprep.mubr.msk.bf16.mxu0 %vm829_vm0, %v785_v41 }
 0x233   : > { %v765_v50 = vpack.c.bf16 %v1849_v49, %v1848_v42  ;;  %v718_v51 = vpop.f32.mrb[7].mxu1  ;;  %1867 = vmatmul.mubr.msk.bf16.vlgmr.msra.gmra.mrb[16].mxu0 %vm829_vm0, %v786_v43 }
 0x234   : > { %v764_v48 = vpack.c.bf16 %v718_v51, %v715_v45  ;;  %1903 = vmatpush3.bf16.msra.mxu0 %v2044_v13 }
 0x235   : > { %v780_v52 = vadd.bf16 %v776_v34, %v765_v50  ;;  %1904 = vmatprep.subr.bf16.mxu0 %v2045_v14 }
 0x236   : > { %v779_v53 = vadd.bf16 %v776_v34, %v764_v48 }
 0x237   : > { %v788_v56 = vmax.bf16 %v2192_v59, %v780_v52 }
 0x238   : > { %v787_v54 = vmax.bf16 %v2192_v59, %v779_v53  ;;  %v1852_v55 = vpop.f32.mrb[8].mxu1  ;;  %1905 = vmatpush3.bf16.msra.mxu0 %v2045_v14 }
 0x239   : > { %v731_v57 = vpop.f32.mrb[9].mxu1  ;;  %1906 = vmatprep.subr.bf16.mxu0 %v2046_v15 }
 0x23a   : > { %v1853_v58 = vpop.f32.mrb[10].mxu1  ;;  %1870 = vmatprep.mubr.msk.bf16.mxu0 %vm829_vm0, %v787_v54 }
 0x23b   : > { %v767_v60 = vpack.c.bf16 %v1853_v58, %v1852_v55  ;;  %v734_v61 = vpop.f32.mrb[11].mxu1  ;;  %1871 = vmatmul.mubr.msk.bf16.gmra.mrb[20].mxu0 %vm829_vm0, %v788_v56 }
 0x23c   : > { %v766_v62 = vpack.c.bf16 %v734_v61, %v731_v57  ;;  %1907 = vmatpush3.bf16.msra.mxu0 %v2046_v15 }
 0x23d   : > { %v782_v63 = vadd.bf16 %v776_v34, %v767_v60 }
 0x23e   : > { %v781_v0 = vadd.bf16 %v776_v34, %v766_v62 }
 0x23f   : > { %v790_v3 = vmax.bf16 %v2192_v59, %v782_v63  ;;  %v2047_v63 = vld [vmem:[%s2719_s5 + $0x18] sm:$0xff]  }
 0x240   : > { %v789_v1 = vmax.bf16 %v2192_v59, %v781_v0  ;;  %v1856_v2 = vpop.f32.mrb[12].mxu1  ;;  %1908 = vmatprep.subr.bf16.mxu0 %v2047_v63  ;;  %v2048_v0 = vld [vmem:[%s2720_s6] sm:$0xff]  }
 0x241   : > { %v747_v4 = vpop.f32.mrb[13].mxu1  ;;  %1909 = vmatpush3.bf16.msra.mxu0 %v2047_v63  ;;  %1926 = vmatprep.subr.bf16.mxu1 %v2048_v0 }
 0x242   : > { %v1857_v5 = vpop.f32.mrb[14].mxu1  ;;  %1874 = vmatprep.mubr.msk.bf16.mxu0 %vm829_vm0, %v789_v1  ;;  %v2049_v1 = vld [vmem:[%s2720_s6 + $0x8] sm:$0xff]  }
 0x243   : > { %v769_v6 = vpack.c.bf16 %v1857_v5, %v1856_v2  ;;  %v750_v7 = vpop.f32.mrb[15].mxu1  ;;  %1875 = vmatmul.mubr.msk.bf16.gmra.mrb[24].mxu0 %vm829_vm0, %v790_v3  ;;  %v2050_v2 = vld [vmem:[%s2720_s6 + $0x10] sm:$0xff]   ;;  %v2051_v3 = vld [vmem:[%s2720_s6 + $0x18] sm:$0xff]   ;;  %v2053_v5 = vld [vmem:[%s2720_s6 + $0x28] sm:$0xff]  }
 0x244   : > { %v768_v8 = vpack.c.bf16 %v750_v7, %v747_v4  ;;  %v2052_v4 = vld [vmem:[%s2720_s6 + $0x20] sm:$0xff]  }
 0x245   : > { %v784_v9 = vadd.bf16 %v776_v34, %v769_v6  ;;  %v1123_v6 = vsub.s32 1, %v2483_v46 }
 0x246   : > { %v783_v10 = vadd.bf16 %v776_v34, %v768_v8 }
 0x247   : > { %v792_v12 = vmax.bf16 %v2192_v59, %v784_v9  ;;  %v1124_v9 = vrot.slane %v2505_v31, %v1123_v6 }
 0x248   : > { %v791_v11 = vmax.bf16 %v2192_v59, %v783_v10 }
 0x24a   : > { %1878 = vmatprep.mubr.msk.bf16.mxu0 %vm829_vm0, %v791_v11 }
 0x24b   : > { %1879 = vmatmul.mubr.msk.bf16.gmra.mrb[28].mxu0 %vm829_vm0, %v792_v12 }
 0x306   : > { %v1868_v18 = vpop.f32.mrb[16].mxu0 }
 0x307   : > { %v897_v19 = vadd.f32 %v1868_v18, %v804_v17  ;;  %v888_v20 = vpop.f32.mrb[17].mxu0 }
 0x308   : > { %v889_v21 = vadd.f32 %v888_v20, %v804_v17  ;;  %v1869_v22 = vpop.f32.mrb[18].mxu0 }
 0x309   : > { %954 = vst.msk [vmem:[%s2543_s16 + $0x10] sm:$0xff] %vm951_vm1, %v897_v19  ;;  %v900_v23 = vadd.f32 %v1869_v22, %v804_v17  ;;  %v891_v24 = vpop.f32.mrb[19].mxu0 }
 0x30a   : > { %952 = vst.msk [vmem:[%s2543_s16] sm:$0xff] %vm951_vm1, %v889_v21  ;;  %v892_v25 = vadd.f32 %v891_v24, %v804_v17 }
 0x30b   : > { %955 = vst.msk [vmem:[%s2543_s16 + $0x18] sm:$0xff] %vm951_vm1, %v900_v23  ;;  %v969_v26 = vpack.c.bf16 %v900_v23, %v897_v19 }
 0x30c   : > { %953 = vst.msk [vmem:[%s2543_s16 + $0x8] sm:$0xff] %vm951_vm1, %v892_v25  ;;  %v968_v27 = vpack.c.bf16 %v892_v25, %v889_v21 }
 0x30e   : > { %v1872_v28 = vpop.f32.mrb[20].mxu0  ;;  %1886 = vmatprep.mubr.msk.bf16.mxu1 %vm951_vm1, %v968_v27 }
 0x30f   : > { %v913_v29 = vadd.f32 %v1872_v28, %v804_v17  ;;  %v904_v30 = vpop.f32.mrb[21].mxu0  ;;  %1887 = vmatmul.mubr.msk.bf16.vlgmr.msra.gmra.mrb[16].mxu1 %vm951_vm1, %v969_v26 }
 0x310   : > { %v905_v32 = vadd.f32 %v904_v30, %v804_v17  ;;  %v1873_v33 = vpop.f32.mrb[22].mxu0  ;;  %1927 = vmatpush3.bf16.msra.mxu1 %v2048_v0 }
 0x311   : > { %958 = vst.msk [vmem:[%s2543_s16 + $0x30] sm:$0xff] %vm951_vm1, %v913_v29  ;;  %v916_v34 = vadd.f32 %v1873_v33, %v804_v17  ;;  %v907_v35 = vpop.f32.mrb[23].mxu0  ;;  %1928 = vmatprep.subr.bf16.mxu1 %v2049_v1 }
 0x312   : > { %956 = vst.msk [vmem:[%s2543_s16 + $0x20] sm:$0xff] %vm951_vm1, %v905_v32  ;;  %v908_v36 = vadd.f32 %v907_v35, %v804_v17 }
 0x313   : > { %959 = vst.msk [vmem:[%s2543_s16 + $0x38] sm:$0xff] %vm951_vm1, %v916_v34  ;;  %v971_v37 = vpack.c.bf16 %v916_v34, %v913_v29 }
 0x314   : > { %957 = vst.msk [vmem:[%s2543_s16 + $0x28] sm:$0xff] %vm951_vm1, %v908_v36  ;;  %v970_v38 = vpack.c.bf16 %v908_v36, %v905_v32  ;;  %1929 = vmatpush3.bf16.msra.mxu1 %v2049_v1 }
 0x315   : > { %1930 = vmatprep.subr.bf16.mxu1 %v2050_v2 }
 0x316   : > { %v1876_v39 = vpop.f32.mrb[24].mxu0  ;;  %1890 = vmatprep.mubr.msk.bf16.mxu1 %vm951_vm1, %v970_v38 }
 0x317   : > { %v929_v40 = vadd.f32 %v1876_v39, %v804_v17  ;;  %v920_v41 = vpop.f32.mrb[25].mxu0  ;;  %1891 = vmatmul.mubr.msk.bf16.gmra.mrb[20].mxu1 %vm951_vm1, %v971_v37 }
 0x318   : > { %v921_v42 = vadd.f32 %v920_v41, %v804_v17  ;;  %v1877_v43 = vpop.f32.mrb[26].mxu0  ;;  %1931 = vmatpush3.bf16.msra.mxu1 %v2050_v2 }
 0x319   : > { %962 = vst.msk [vmem:[%s2543_s16 + $0x50] sm:$0xff] %vm951_vm1, %v929_v40  ;;  %v932_v45 = vadd.f32 %v1877_v43, %v804_v17  ;;  %v923_v49 = vpop.f32.mrb[27].mxu0  ;;  %1932 = vmatprep.subr.bf16.mxu1 %v2051_v3 }
 0x31a   : > { %960 = vst.msk [vmem:[%s2543_s16 + $0x40] sm:$0xff] %vm951_vm1, %v921_v42  ;;  %v924_v50 = vadd.f32 %v923_v49, %v804_v17 }
 0x31b   : > { %963 = vst.msk [vmem:[%s2543_s16 + $0x58] sm:$0xff] %vm951_vm1, %v932_v45  ;;  %v973_v51 = vpack.c.bf16 %v932_v45, %v929_v40 }
 0x31c   : > { %961 = vst.msk [vmem:[%s2543_s16 + $0x48] sm:$0xff] %vm951_vm1, %v924_v50  ;;  %v972_v48 = vpack.c.bf16 %v924_v50, %v921_v42  ;;  %1933 = vmatpush3.bf16.msra.mxu1 %v2051_v3 }
 0x31d   : > { %1934 = vmatprep.subr.bf16.mxu1 %v2052_v4 }
 0x31e   : > { %v1880_v52 = vpop.f32.mrb[28].mxu0  ;;  %1894 = vmatprep.mubr.msk.bf16.mxu1 %vm951_vm1, %v972_v48 }
 0x31f   : > { %v945_v53 = vadd.f32 %v1880_v52, %v804_v17  ;;  %v936_v54 = vpop.f32.mrb[29].mxu0  ;;  %1895 = vmatmul.mubr.msk.bf16.gmra.mrb[24].mxu1 %vm951_vm1, %v973_v51  ;;  %v2054_v52 = vld [vmem:[%s2720_s6 + $0x30] sm:$0xff]  }
 0x320   : > { %v937_v55 = vadd.f32 %v936_v54, %v804_v17  ;;  %v1881_v56 = vpop.f32.mrb[30].mxu0  ;;  %1935 = vmatpush3.bf16.msra.mxu1 %v2052_v4 }
 0x321   : > { %966 = vst.msk [vmem:[%s2543_s16 + $0x70] sm:$0xff] %vm951_vm1, %v945_v53  ;;  %v948_v57 = vadd.f32 %v1881_v56, %v804_v17  ;;  %v939_v58 = vpop.f32.mrb[31].mxu0  ;;  %1936 = vmatprep.subr.bf16.mxu1 %v2053_v5  ;;  %v1305_v56 = vrot.slane %v2487_v47, %v803_v16 }
 0x322   : > { %964 = vst.msk [vmem:[%s2543_s16 + $0x60] sm:$0xff] %vm951_vm1, %v937_v55  ;;  %v940_v60 = vadd.f32 %v939_v58, %v804_v17 }
 0x323   : > { %967 = vst.msk [vmem:[%s2543_s16 + $0x78] sm:$0xff] %vm951_vm1, %v948_v57  ;;  %v975_v61 = vpack.c.bf16 %v948_v57, %v945_v53  ;;  %v2055_v53 = vld [vmem:[%s2720_s6 + $0x38] sm:$0xff]  }
 0x324   : > { %965 = vst.msk [vmem:[%s2543_s16 + $0x68] sm:$0xff] %vm951_vm1, %v940_v60  ;;  %v974_v62 = vpack.c.bf16 %v940_v60, %v937_v55  ;;  %1937 = vmatpush3.bf16.msra.mxu1 %v2053_v5  ;;  %s2114_s16 = scalar_lea.vmem %s2667_s22, 2048 }
 0x325   : > { %1938 = vmatprep.subr.bf16.mxu1 %v2054_v52  ;;  %p2115_p6 = scmp.ne.s32.totalorder %s2667_s22, %s2114_s16  ;;  %p2122_p3 = scmp.lt.s32.totalorder %s2120_s27, %s2114_s16 }
 0x326   : > { %1898 = vmatprep.mubr.msk.bf16.mxu1 %vm951_vm1, %v974_v62 }
 0x327   : > { %1899 = vmatmul.mubr.msk.bf16.gmra.mrb[28].mxu1 %vm951_vm1, %v975_v61  ;;  %p2116_p8 = pnand %p2115_p6, %p2337_p12  ;;  %p2123_p7 = por %p2122_p3, %p2121_p13 }
 0x328   : > { %1939 = vmatpush3.bf16.msra.mxu1 %v2054_v52 }
 0x329   : > { %1940 = vmatprep.subr.bf16.mxu1 %v2055_v53  ;;  %p2117_p10 = pneg %p2116_p8 }
 0x32b   : > { %p2124_p9 = pnand %p2123_p7, %p2117_p10 }
 0x32c   : > { %1941 = vmatpush3.bf16.msra.mxu1 %v2055_v53 }
 0x3e2   : > { %v1888_v7 = vpop.f32.mrb[16].mxu1 }
 0x3e3   : > { %v1050_v8 = vpop.f32.mrb[17].mxu1 }
 0x3e4   : > { %v1889_v10 = vpop.f32.mrb[18].mxu1 }
 0x3e5   : > { %v1114_v11 = vpack.c.bf16 %v1889_v10, %v1888_v7  ;;  %v1053_v12 = vpop.f32.mrb[19].mxu1 }
 0x3e6   : > { %v1113_v13 = vpack.c.bf16 %v1053_v12, %v1050_v8 }
 0x3e7   : > { %v1126_v14 = vadd.bf16 %v1124_v9, %v1114_v11 }
 0x3e8   : > { %v1125_v15 = vadd.bf16 %v1124_v9, %v1113_v13 }
 0x3e9   : > { %v1134_v19 = vmax.bf16 %v2192_v59, %v1126_v14 }
 0x3ea   : > { %v1133_v17 = vmax.bf16 %v2192_v59, %v1125_v15  ;;  %v1892_v18 = vpop.f32.mrb[20].mxu1 }
 0x3eb   : > { %v1066_v20 = vpop.f32.mrb[21].mxu1 }
 0x3ec   : > { %v1893_v21 = vpop.f32.mrb[22].mxu1  ;;  %1910 = vmatprep.mubr.msk.bf16.mxu0 %vm829_vm0, %v1133_v17 }
 0x3ed   : > { %v1116_v22 = vpack.c.bf16 %v1893_v21, %v1892_v18  ;;  %v1069_v23 = vpop.f32.mrb[23].mxu1  ;;  %1911 = vmatmul.mubr.msk.bf16.vlgmr.msra.gmra.mrb[32].mxu0 %vm829_vm0, %v1134_v19 }
 0x3ee   : > { %v1115_v31 = vpack.c.bf16 %v1069_v23, %v1066_v20 }
 0x3ef   : > { %v1128_v24 = vadd.bf16 %v1124_v9, %v1116_v22 }
 0x3f0   : > { %v1127_v25 = vadd.bf16 %v1124_v9, %v1115_v31 }
 0x3f1   : > { %v1136_v28 = vmax.bf16 %v2192_v59, %v1128_v24 }
 0x3f2   : > { %v1135_v26 = vmax.bf16 %v2192_v59, %v1127_v25  ;;  %v1896_v27 = vpop.f32.mrb[24].mxu1 }
 0x3f3   : > { %v1082_v29 = vpop.f32.mrb[25].mxu1 }
 0x3f4   : > { %v1897_v30 = vpop.f32.mrb[26].mxu1  ;;  %1914 = vmatprep.mubr.msk.bf16.mxu0 %vm829_vm0, %v1135_v26 }
 0x3f5   : > { %v1118_v32 = vpack.c.bf16 %v1897_v30, %v1896_v27  ;;  %v1085_v33 = vpop.f32.mrb[27].mxu1  ;;  %1915 = vmatmul.mubr.msk.bf16.gmra.mrb[36].mxu0 %vm829_vm0, %v1136_v28  ;;  %v1340_v30 = vsub.s32 5, %v2483_v46 }
 0x3f6   : > { %v1117_v34 = vpack.c.bf16 %v1085_v33, %v1082_v29 }
 0x3f7   : > { %v1130_v35 = vadd.bf16 %v1124_v9, %v1118_v32  ;;  %v1341_v32 = vrot.slane %v2477_v44, %v1340_v30 }
 0x3f8   : > { %v1129_v36 = vadd.bf16 %v1124_v9, %v1117_v34 }
 0x3f9   : > { %v1138_v39 = vmax.bf16 %v2192_v59, %v1130_v35 }
 0x3fa   : > { %v1137_v37 = vmax.bf16 %v2192_v59, %v1129_v36  ;;  %v1900_v38 = vpop.f32.mrb[28].mxu1 }
 0x3fb   : > { %v1098_v40 = vpop.f32.mrb[29].mxu1 }
 0x3fc   : > { %v1901_v41 = vpop.f32.mrb[30].mxu1  ;;  %1918 = vmatprep.mubr.msk.bf16.mxu0 %vm829_vm0, %v1137_v37 }
 0x3fd   : > { %v1120_v42 = vpack.c.bf16 %v1901_v41, %v1900_v38  ;;  %v1101_v43 = vpop.f32.mrb[31].mxu1  ;;  %1919 = vmatmul.mubr.msk.bf16.gmra.mrb[40].mxu0 %vm829_vm0, %v1138_v39 }
 0x3fe   : > { %v1119_v45 = vpack.c.bf16 %v1101_v43, %v1098_v40 }
 0x3ff   : > { %v1132_v49 = vadd.bf16 %v1124_v9, %v1120_v42 }
 0x400   : > { %v1131_v50 = vadd.bf16 %v1124_v9, %v1119_v45 }
 0x401   : > { %v1140_v48 = vmax.bf16 %v2192_v59, %v1132_v49 }
 0x402   : > { %v1139_v51 = vmax.bf16 %v2192_v59, %v1131_v50 }
 0x404   : > { %1922 = vmatprep.mubr.msk.bf16.mxu0 %vm829_vm0, %v1139_v51 }
 0x405   : > { %1923 = vmatmul.mubr.msk.bf16.gmra.mrb[44].mxu0 %vm829_vm0, %v1140_v48 }
 0x4c0   : > { %v1912_v54 = vpop.f32.mrb[32].mxu0 }
 0x4c1   : > { %v1231_v55 = vpop.f32.mrb[33].mxu0 }
 0x4c2   : > { %v1913_v57 = vpop.f32.mrb[34].mxu0 }
 0x4c3   : > { %v1295_v58 = vpack.c.bf16 %v1913_v57, %v1912_v54  ;;  %v1234_v60 = vpop.f32.mrb[35].mxu0 }
 0x4c4   : > { %v1294_v61 = vpack.c.bf16 %v1234_v60, %v1231_v55 }
 0x4c5   : > { %v1307_v62 = vadd.bf16 %v1305_v56, %v1295_v58 }
 0x4c6   : > { %v1306_v63 = vadd.bf16 %v1305_v56, %v1294_v61 }
 0x4c7   : > { %v1315_v2 = vmax.bf16 %v2192_v59, %v1307_v62 }
 0x4c8   : > { %v1916_v0 = vpop.f32.mrb[36].mxu0  ;;  %v1314_v1 = vmax.bf16 %v2192_v59, %v1306_v63 }
 0x4c9   : > { %v1247_v3 = vpop.f32.mrb[37].mxu0 }
 0x4ca   : > { %v1917_v4 = vpop.f32.mrb[38].mxu0  ;;  %1942 = vmatprep.mubr.bf16.mxu1 %v1314_v1 }
 0x4cb   : > { %v1297_v5 = vpack.c.bf16 %v1917_v4, %v1916_v0  ;;  %v1250_v6 = vpop.f32.mrb[39].mxu0  ;;  %1943 = vmatmul.mubr.bf16.vlgmr.msra.gmra.mrb[32].mxu1 %v1315_v2 }
 0x4cc   : > { %v1296_v7 = vpack.c.bf16 %v1250_v6, %v1247_v3 }
 0x4cd   : > { %v1309_v8 = vadd.bf16 %v1305_v56, %v1297_v5 }
 0x4ce   : > { %v1308_v47 = vadd.bf16 %v1305_v56, %v1296_v7 }
 0x4cf   : > { %v1317_v11 = vmax.bf16 %v2192_v59, %v1309_v8 }
 0x4d0   : > { %v1920_v16 = vpop.f32.mrb[40].mxu0  ;;  %v1316_v9 = vmax.bf16 %v2192_v59, %v1308_v47 }
 0x4d1   : > { %v1263_v10 = vpop.f32.mrb[41].mxu0 }
 0x4d2   : > { %v1921_v12 = vpop.f32.mrb[42].mxu0  ;;  %1946 = vmatprep.mubr.bf16.mxu1 %v1316_v9 }
 0x4d3   : > { %v1299_v13 = vpack.c.bf16 %v1921_v12, %v1920_v16  ;;  %v1266_v14 = vpop.f32.mrb[43].mxu0  ;;  %1947 = vmatmul.mubr.bf16.gmra.mrb[36].mxu1 %v1317_v11 }
 0x4d4   : > { %v1298_v15 = vpack.c.bf16 %v1266_v14, %v1263_v10 }
 0x4d5   : > { %v1311_v17 = vadd.bf16 %v1305_v56, %v1299_v13 }
 0x4d6   : > { %v1310_v18 = vadd.bf16 %v1305_v56, %v1298_v15 }
 0x4d7   : > { %v1319_v22 = vmax.bf16 %v2192_v59, %v1311_v17 }
 0x4d8   : > { %v1924_v19 = vpop.f32.mrb[44].mxu0  ;;  %v1318_v20 = vmax.bf16 %v2192_v59, %v1310_v18 }
 0x4d9   : > { %v1279_v21 = vpop.f32.mrb[45].mxu0 }
 0x4da   : > { %v1925_v23 = vpop.f32.mrb[46].mxu0  ;;  %1950 = vmatprep.mubr.bf16.mxu1 %v1318_v20 }
 0x4db   : > { %v1301_v31 = vpack.c.bf16 %v1925_v23, %v1924_v19  ;;  %v1282_v24 = vpop.f32.mrb[47].mxu0  ;;  %1951 = vmatmul.mubr.bf16.gmra.mrb[40].mxu1 %v1319_v22 }
 0x4dc   : > { %v1300_v25 = vpack.c.bf16 %v1282_v24, %v1279_v21 }
 0x4dd   : > { %v1313_v26 = vadd.bf16 %v1305_v56, %v1301_v31 }
 0x4de   : > { %v1312_v27 = vadd.bf16 %v1305_v56, %v1300_v25 }
 0x4df   : > { %v1321_v29 = vmax.bf16 %v2192_v59, %v1313_v26 }
 0x4e0   : > { %v1320_v28 = vmax.bf16 %v2192_v59, %v1312_v27 }
 0x4e2   : > { %1954 = vmatprep.mubr.bf16.mxu1 %v1320_v28 }
 0x4e3   : > { %1955 = vmatmul.mubr.bf16.gmra.mrb[44].mxu1 %v1321_v29 }
 0x59e   : > { %v1944_v33 = vpop.f32.mrb[32].mxu1 }
 0x59f   : > { %v1433_v34 = vadd.f32 %v1944_v33, %v1341_v32  ;;  %v1424_v35 = vpop.f32.mrb[33].mxu1 }
 0x5a0   : > { %v1425_v36 = vadd.f32 %v1424_v35, %v1341_v32  ;;  %v1945_v37 = vpop.f32.mrb[34].mxu1 }
 0x5a1   : > { %1489 = vst [vmem:[%s2645_s19 + $0x10] sm:$0xff] %v1433_v34  ;;  %v1436_v59 = vadd.f32 %v1945_v37, %v1341_v32  ;;  %v1427_v46 = vpop.f32.mrb[35].mxu1 }
 0x5a2   : > { %1487 = vst [vmem:[%s2645_s19] sm:$0xff] %v1425_v36  ;;  %v1428_v44 = vadd.f32 %v1427_v46, %v1341_v32 }
 0x5a3   : > { %1490 = vst [vmem:[%s2645_s19 + $0x18] sm:$0xff] %v1436_v59 }
 0x5a4   : > { %1488 = vst [vmem:[%s2645_s19 + $0x8] sm:$0xff] %v1428_v44 }
 0x5a6   : > { %v1948_v38 = vpop.f32.mrb[36].mxu1 }
 0x5a7   : > { %v1449_v39 = vadd.f32 %v1948_v38, %v1341_v32  ;;  %v1440_v40 = vpop.f32.mrb[37].mxu1 }
 0x5a8   : > { %v1441_v41 = vadd.f32 %v1440_v40, %v1341_v32  ;;  %v1949_v42 = vpop.f32.mrb[38].mxu1 }
 0x5a9   : > { %1493 = vst [vmem:[%s2645_s19 + $0x30] sm:$0xff] %v1449_v39  ;;  %v1452_v43 = vadd.f32 %v1949_v42, %v1341_v32  ;;  %v1443_v45 = vpop.f32.mrb[39].mxu1 }
 0x5aa   : > { %1491 = vst [vmem:[%s2645_s19 + $0x20] sm:$0xff] %v1441_v41  ;;  %v1444_v49 = vadd.f32 %v1443_v45, %v1341_v32 }
 0x5ab   : > { %1494 = vst [vmem:[%s2645_s19 + $0x38] sm:$0xff] %v1452_v43 }
 0x5ac   : > { %1492 = vst [vmem:[%s2645_s19 + $0x28] sm:$0xff] %v1444_v49 }
 0x5ae   : > { %v1952_v50 = vpop.f32.mrb[40].mxu1 }
 0x5af   : > { %v1465_v51 = vadd.f32 %v1952_v50, %v1341_v32  ;;  %v1456_v48 = vpop.f32.mrb[41].mxu1 }
 0x5b0   : > { %v1457_v52 = vadd.f32 %v1456_v48, %v1341_v32  ;;  %v1953_v53 = vpop.f32.mrb[42].mxu1 }
 0x5b1   : > { %1497 = vst [vmem:[%s2645_s19 + $0x50] sm:$0xff] %v1465_v51  ;;  %v1468_v54 = vadd.f32 %v1953_v53, %v1341_v32  ;;  %v1459_v55 = vpop.f32.mrb[43].mxu1 }
 0x5b2   : > { %1495 = vst [vmem:[%s2645_s19 + $0x40] sm:$0xff] %v1457_v52  ;;  %v1460_v56 = vadd.f32 %v1459_v55, %v1341_v32 }
 0x5b3   : > { %1498 = vst [vmem:[%s2645_s19 + $0x58] sm:$0xff] %v1468_v54 }
 0x5b4   : > { %1496 = vst [vmem:[%s2645_s19 + $0x48] sm:$0xff] %v1460_v56 }
 0x5b6   : > { %v1956_v57 = vpop.f32.mrb[44].mxu1 }
 0x5b7   : > { %v1481_v58 = vadd.f32 %v1956_v57, %v1341_v32  ;;  %v1472_v60 = vpop.f32.mrb[45].mxu1 }
 0x5b8   : > { %v1473_v61 = vadd.f32 %v1472_v60, %v1341_v32  ;;  %v1957_v62 = vpop.f32.mrb[46].mxu1 }
 0x5b9   : > { %1501 = vst [vmem:[%s2645_s19 + $0x70] sm:$0xff] %v1481_v58  ;;  %v1484_v63 = vadd.f32 %v1957_v62, %v1341_v32  ;;  %v1475_v0 = vpop.f32.mrb[47].mxu1 }
 0x5ba   : > { %1499 = vst [vmem:[%s2645_s19 + $0x60] sm:$0xff] %v1473_v61  ;;  %v1476_v1 = vadd.f32 %v1475_v0, %v1341_v32 }
 0x5bb   : > { %1502 = vst [vmem:[%s2645_s19 + $0x78] sm:$0xff] %v1484_v63 }
 0x5bc   : > { %1500 = vst [vmem:[%s2645_s19 + $0x68] sm:$0xff] %v1476_v1 }
 0x5bd   : > { %2127 = shalt.err (!%p2124_p9)
}
 0x5be   : > { %s2128_s14 = scalar_lea.hbm %s2665_s24, 2048  ;;  %s2132_s19 = scalar_lea.hbm %s2723_s9, 4096 }
 0x5bf   : > { %p2129_p2 = scmp.ne.s32.totalorder %s2665_s24, %s2128_s14  ;;  %p2133_p11 = scmp.lt.u32.totalorder %s2665_s24, %s2723_s9 }
 0x5c0   : > { %p2134_p1 = scmp.lt.u32.totalorder %s2132_s19, %s2128_s14  ;;  %p2136_p6 = scmp.lt.u32.totalorder %s2128_s14, %s2665_s24 }
 0x5c1   : > { %p2130_p0 = pnand %p2129_p2, %p2337_p12 }
 0x5c2   : > { %p2135_p4 = por %p2134_p1, %p2133_p11 }
 0x5c3   : > { %p2131_p5 = pneg %p2130_p0 }
 0x5c4   : > { %p2137_p8 = por %p2136_p6, %p2135_p4 }
 0x5c6   : > { %p2138_p10 = pnand %p2137_p8, %p2131_p5 }
 0x5c8   : > { %2141 = shalt.err (!%p2138_p10)
}
 0x5c9   : > { %s2194_s15 = smov 128   ;;  %s2195_s16 = smov 8  }
 0x5ca   : > { %1964 = dma.vmem_to_hbm [thread:$0]  (%p2337_p12), %s2667_s22, 2048, %s2665_s24, %s1509_s13, %s2194_s15, %s2194_s15, %s2195_s16  }
 0x5cb PF: > { %s2743_s21 = sld [smem:[#allocation11_spill]]  ;;  %s1549_s25 = sand.u32 1, %s2172_s30  }
 0x5cc   : > { %p2745_p3 = scmp.ge.s32.totalorder %s2184_s12, 2  ;;  %s1550_s27 = scalar_lea.sflag [#allocation4], %s1549_s25 }
 0x5d1   : > { %p2744_p13 = scmp.ne.s32.totalorder %s2743_s21, 0 }
 0x5d3   : > { %p1975_p7 = pnand %p2745_p3, %p2744_p13 }
 0x5d5   : > { %2167 = dma.done.wait (!%p1975_p7), %s1550_s27, 2048  }
 0x5d6   : > { %2169 = vsyncadd (!%p1975_p7), %s1550_s27, 4294965248  ;;  %s2746_s12 = sld [smem:[#allocation12_spill]]  ;;  %s2747_s30 = smov %s2176_s10 }
 0x5d7   : > { %s2748_s10 = smov %s2180_s11  ;;  %s2749_s11 = smov %s2333_s28 }
 0x5dc   : > { %p24_p9 = scmp.ge.s32.totalorder %s2746_s12, 4  }
 0x5de   :  { %26 = sbr.rel (!%p24_p9) target bundleno = 6 (0x6), region = 113 }
 0x5e5   :  { %1555 = vsyncpa [#allocation3], 1 }
 0x5e6   :  { %1557 = vsyncpa [#allocation3 + $0x1], 1 }
 0x5e7   :  { %1558 = vsyncpa [#allocation6], 1 }
 0x5e8   :  { %1559 = vsyncpa [#allocation4], 1 }
 0x5e9   :  { %1561 = vsyncpa [#allocation4 + $0x1], 1 }

</bundles_post_ra>
